<compile_context>
chip_gen: v7x
topology: tpu7x:2x2x1
jax: 0.10.0
libtpu: 0.0.40
codegen_flags: <defaults>
</compile_context>

<pallas_src>
import functools

import jax
import jax.numpy as jnp
from jax.experimental import pallas as pl
from jax.experimental.pallas import tpu as pltpu


NEG_SLOPE = 0.01  # nn.LeakyReLU default
BN_EPS = 1e-5     # nn.BatchNorm1d default

LANE = 128
SUBLANE = 8
TB_CAP = 512      # batch-tile cap (multiple of 8); big tiles amortize per-step overhead


def _leaky_relu(x):
    return jnp.where(x >= 0, x, NEG_SLOPE * x)


def _round_up(x, m):
    return ((x + m - 1) // m) * m


# --------------------------------------------------------------------------- kernel
def encoder_kernel(x_ref, w1_ref, b1_ref, w2_ref, b2_ref, w3_ref, b3_ref, out_ref):
    """3x (matmul + bias + LeakyReLU) for one (TB, in_dim) batch tile.

    BatchNorm is pre-folded into the weights/biases. Layers 1-2 run bf16 on the
    MXU with f32 accumulation; layer 3 (tiny) runs f32 for latent precision.
    Bias-add / LeakyReLU epilogues stay in f32 (no bf16 VPU on v5e).
    """
    # ---- block 1: Linear(784->200) (+folded BN) + LeakyReLU   (Dropout = identity)
    x = x_ref[...].astype(jnp.bfloat16)          # cast in-kernel; no wrapper copy pass
    h = jnp.dot(x, w1_ref[...], preferred_element_type=jnp.float32)
    h = _leaky_relu(h + b1_ref[...])

    # ---- block 2: Linear(200->100) (+folded BN) + LeakyReLU   (Dropout = identity)
    h = jnp.dot(h.astype(jnp.bfloat16), w2_ref[...], preferred_element_type=jnp.float32)
    h = _leaky_relu(h + b2_ref[...])

    # ---- block 3: Linear(100->20) (+folded BN) + LeakyReLU    (f32, tiny)
    h = jnp.dot(h, w3_ref[...], preferred_element_type=jnp.float32)
    out_ref[...] = _leaky_relu(h + b3_ref[...]).astype(out_ref.dtype)


# --------------------------------------------------------------------- param folding
def _fold_bn(gamma, beta, running_mean, running_var, eps=BN_EPS):
    scale = gamma / jnp.sqrt(running_var + eps)
    shift = beta - running_mean * scale
    return scale, shift


def _fold_layer(w, b, g, beta, rm, rv, k_pad, n_pad, weight_dtype):
    """Fold BN into (w, b), zero-pad to (k_pad, n_pad) / (1, n_pad), cast weight."""
    scale, shift = _fold_bn(g, beta, rm, rv)
    w_f = w * scale[None, :]              # scale each output column
    b_f = b * scale + shift
    k, n = w_f.shape
    w_p = jnp.pad(w_f, ((0, k_pad - k), (0, n_pad - n))).astype(weight_dtype)
    b_p = jnp.pad(b_f, (0, n_pad - n)).reshape(1, n_pad).astype(jnp.float32)
    return w_p, b_p


def prepare_encoder_params(params):
    """One-time (model-load) prep: fold BN into Linear, pad N dims to lanes, cast.

    Runs OUTSIDE the per-call forward so its ~dozen tiny XLA ops are not paid on
    every inference call.
    """
    in_dim = params["w1"].shape[0]
    d1 = params["w1"].shape[1]
    d2 = params["w2"].shape[1]
    latent_dim = params["w3"].shape[1]

    N1 = _round_up(d1, LANE)
    N2 = _round_up(d2, LANE)
    N3 = _round_up(latent_dim, LANE)

    # No K padding: K1 = in_dim (full-array weight block; x block uses full last dim).
    w1, b1 = _fold_layer(params["w1"], params["b1"], params["g1"], params["beta1"],
                         params["rm1"], params["rv1"], in_dim, N1, jnp.bfloat16)
    w2, b2 = _fold_layer(params["w2"], params["b2"], params["g2"], params["beta2"],
                         params["rm2"], params["rv2"], N1, N2, jnp.bfloat16)
    # Last layer is tiny; keep f32 so bf16 rounding of BN-scaled weights doesn't
    # degrade the latent projection.
    w3, b3 = _fold_layer(params["w3"], params["b3"], params["g3"], params["beta3"],
                         params["rm3"], params["rv3"], N2, N3, jnp.float32)
    return (w1, b1, w2, b2, w3, b3)


# ------------------------------------------------------------------------- forward
def _pick_batch_tiling(B):
    """Pick (TB, B_pad): TB multiple of 8, <= TB_CAP, tail waste <= one sublane round."""
    tb0 = min(TB_CAP, _round_up(B, SUBLANE))
    n_tiles = -(-B // tb0)                       # ceil div
    tb = _round_up(-(-B // n_tiles), SUBLANE)    # roughly-equal tiles, sublane-aligned
    return tb, n_tiles * tb


@functools.partial(jax.jit, static_argnames=("latent_dim",))
def encoder_forward(x, prepped, latent_dim):
    """x: (B, input_size) float32. prepped: output of prepare_encoder_params."""
    w1, b1, w2, b2, w3, b3 = prepped
    B, in_dim = x.shape
    N1 = w1.shape[1]
    N2 = w2.shape[1]
    N3 = w3.shape[1]

    TB, B_pad = _pick_batch_tiling(B)
    if B_pad != B:                               # at most one sublane-rounded remainder
        x = jnp.pad(x, ((0, B_pad - B), (0, 0)))

    resident = lambda i: (0, 0)  # weights/bias: same block every grid step (VMEM-resident)
    out_padded = pl.pallas_call(
        encoder_kernel,
        out_shape=jax.ShapeDtypeStruct((B_pad, N3), jnp.float32),
        grid=(B_pad // TB,),
        in_specs=[
            pl.BlockSpec((TB, in_dim), lambda i: (i, 0)),   # x tile (pipelined, f32)
            pl.BlockSpec((in_dim, N1), resident),           # w1 (bf16)
            pl.BlockSpec((1, N1), resident),                # b1 (f32)
            pl.BlockSpec((N1, N2), resident),               # w2 (bf16)
            pl.BlockSpec((1, N2), resident),                # b2 (f32)
            pl.BlockSpec((N2, N3), resident),               # w3 (f32)
            pl.BlockSpec((1, N3), resident),                # b3 (f32)
        ],
        out_specs=pl.BlockSpec((TB, N3), lambda i: (i, 0)),
        compiler_params=pltpu.CompilerParams(
            dimension_semantics=("parallel",)),             # megacore split on v7x
    )(x, w1, b1, w2, b2, w3, b3)

    return out_padded[:B, :latent_dim]


# ------------------------------------------------------------------- test utilities
def init_params(key, input_size=28 * 28, latent_dim=20):
    dims = [(input_size, 200), (200, 100), (100, latent_dim)]
    params = {}
    for i, (fan_in, fan_out) in enumerate(dims, start=1):
        key, kw, kb, kg, kbe, krm, krv = jax.random.split(key, 7)
        bound = 1.0 / jnp.sqrt(fan_in)
        params[f"w{i}"] = jax.random.uniform(
            kw, (fan_in, fan_out), jnp.float32, -bound, bound)
        params[f"b{i}"] = jax.random.uniform(
            kb, (fan_out,), jnp.float32, -bound, bound)
        # BatchNorm params / running stats (deterministic, non-trivial values).
        params[f"g{i}"] = 1.0 + 0.1 * jax.random.normal(kg, (fan_out,), jnp.float32)
        params[f"beta{i}"] = 0.1 * jax.random.normal(kbe, (fan_out,), jnp.float32)
        params[f"rm{i}"] = 0.05 * jax.random.normal(krm, (fan_out,), jnp.float32)
        params[f"rv{i}"] = jax.random.uniform(
            krv, (fan_out,), jnp.float32, 0.5, 1.5)
    return params


def encoder_reference(x, params):
    """Pure-JAX f32 reference of the same eval-mode forward (sanity check)."""
    h = x
    for i in range(1, 4):
        h = h @ params[f"w{i}"] + params[f"b{i}"]
        s, t = _fold_bn(params[f"g{i}"], params[f"beta{i}"],
                        params[f"rm{i}"], params[f"rv{i}"])
        h = h * s + t
        h = _leaky_relu(h)
    return h


if __name__ == "__main__":
    key = jax.random.PRNGKey(0)
    k_param, k_x = jax.random.split(key)

    input_size = 28 * 28   # 784, as in the module default
    latent_dim = 20
    batch = 8

    params = init_params(k_param, input_size=input_size, latent_dim=latent_dim)
    x = jax.random.normal(k_x, (batch, input_size), jnp.float32)

    # One-time (load-time) fold/pad/cast of the weights, then the fast forward.
    prepped = prepare_encoder_params(params)
    out = encoder_forward(x, prepped, latent_dim=latent_dim)
    out = jax.block_until_ready(out)

    ref = encoder_reference(x, params)
    assert out.shape == (batch, latent_dim)
    # bf16 operands (layers 1-2) with f32 accumulation: loosened tolerance vs. f32 ref.
    assert jnp.allclose(out, ref, atol=2e-2, rtol=2e-2), "mismatch vs. JAX reference"

    print("KERNEL_OK")
</pallas_src>

<mosaic_0001>
module attributes {stable_mosaic.version = 11 : i64} {
  func.func @encoder_kernel(%arg0: i32, %arg1: memref<8x784xf32, #tpu.memory_space<vmem>>, %arg2: memref<784x256xbf16, #tpu.memory_space<vmem>>, %arg3: memref<1x256xf32, #tpu.memory_space<vmem>>, %arg4: memref<256x128xbf16, #tpu.memory_space<vmem>>, %arg5: memref<1x128xf32, #tpu.memory_space<vmem>>, %arg6: memref<128x128xf32, #tpu.memory_space<vmem>>, %arg7: memref<1x128xf32, #tpu.memory_space<vmem>>, %arg8: memref<8x128xf32, #tpu.memory_space<vmem>>) attributes {dimension_semantics = [#tpu.dimension_semantics<parallel>], iteration_bounds = array<i64: 1>, scalar_prefetch = 0 : i64, scratch_operands = 0 : i64, tpu.core_type = #tpu.core_type<tc>, window_params = [{transform_indices = @transform_0, window_bounds = array<i64: 8, 784>}, {pipeline_mode = #tpu.pipeline_mode<synchronous>, transform_indices = @transform_1, window_bounds = array<i64: 784, 256>}, {pipeline_mode = #tpu.pipeline_mode<synchronous>, transform_indices = @transform_2, window_bounds = array<i64: 1, 256>}, {pipeline_mode = #tpu.pipeline_mode<synchronous>, transform_indices = @transform_3, window_bounds = array<i64: 256, 128>}, {pipeline_mode = #tpu.pipeline_mode<synchronous>, transform_indices = @transform_4, window_bounds = array<i64: 1, 128>}, {pipeline_mode = #tpu.pipeline_mode<synchronous>, transform_indices = @transform_5, window_bounds = array<i64: 128, 128>}, {pipeline_mode = #tpu.pipeline_mode<synchronous>, transform_indices = @transform_6, window_bounds = array<i64: 1, 128>}, {transform_indices = @transform_7, window_bounds = array<i64: 8, 128>}]} {
    %c0 = arith.constant 0 : index
    %c0_0 = arith.constant 0 : index
    %0 = vector.load %arg1[%c0, %c0_0] : memref<8x784xf32, #tpu.memory_space<vmem>>, vector<8x784xf32>
    %1 = arith.truncf %0 : vector<8x784xf32> to vector<8x784xbf16>
    %c0_1 = arith.constant 0 : index
    %c0_2 = arith.constant 0 : index
    %2 = vector.load %arg2[%c0_1, %c0_2] : memref<784x256xbf16, #tpu.memory_space<vmem>>, vector<784x256xbf16>
    %cst = arith.constant dense<0.000000e+00> : vector<8x256xf32>
    %3 = tpu.matmul %1, %2, %cst {dimension_numbers = #tpu.dot_dimension_numbers<[1], [0], [0], [1], [0, 0, 1, 1], [], []>} : vector<8x784xbf16>, vector<784x256xbf16>, vector<8x256xf32> -> vector<8x256xf32>
    %c0_3 = arith.constant 0 : index
    %c0_4 = arith.constant 0 : index
    %4 = vector.load %arg3[%c0_3, %c0_4] : memref<1x256xf32, #tpu.memory_space<vmem>>, vector<1x256xf32>
    %5 = vector.broadcast %4 : vector<1x256xf32> to vector<8x256xf32>
    %6 = arith.addf %3, %5 : vector<8x256xf32>
    %cst_5 = arith.constant 0.000000e+00 : f32
    %7 = vector.broadcast %cst_5 : f32 to vector<8x256xf32>
    %8 = arith.cmpf oge, %6, %7 : vector<8x256xf32>
    %cst_6 = arith.constant 0.00999999977 : f32
    %9 = vector.broadcast %cst_6 : f32 to vector<8x256xf32>
    %10 = arith.mulf %9, %6 : vector<8x256xf32>
    %11 = arith.select %8, %6, %10 : vector<8x256xi1>, vector<8x256xf32>
    %12 = arith.truncf %11 : vector<8x256xf32> to vector<8x256xbf16>
    %c0_7 = arith.constant 0 : index
    %c0_8 = arith.constant 0 : index
    %13 = vector.load %arg4[%c0_7, %c0_8] : memref<256x128xbf16, #tpu.memory_space<vmem>>, vector<256x128xbf16>
    %cst_9 = arith.constant dense<0.000000e+00> : vector<8x128xf32>
    %14 = tpu.matmul %12, %13, %cst_9 {dimension_numbers = #tpu.dot_dimension_numbers<[1], [0], [0], [1], [0, 0, 1, 1], [], []>} : vector<8x256xbf16>, vector<256x128xbf16>, vector<8x128xf32> -> vector<8x128xf32>
    %c0_10 = arith.constant 0 : index
    %c0_11 = arith.constant 0 : index
    %15 = vector.load %arg5[%c0_10, %c0_11] : memref<1x128xf32, #tpu.memory_space<vmem>>, vector<1x128xf32>
    %16 = vector.broadcast %15 : vector<1x128xf32> to vector<8x128xf32>
    %17 = arith.addf %14, %16 : vector<8x128xf32>
    %cst_12 = arith.constant 0.000000e+00 : f32
    %18 = vector.broadcast %cst_12 : f32 to vector<8x128xf32>
    %19 = arith.cmpf oge, %17, %18 : vector<8x128xf32>
    %cst_13 = arith.constant 0.00999999977 : f32
    %20 = vector.broadcast %cst_13 : f32 to vector<8x128xf32>
    %21 = arith.mulf %20, %17 : vector<8x128xf32>
    %22 = arith.select %19, %17, %21 : vector<8x128xi1>, vector<8x128xf32>
    %c0_14 = arith.constant 0 : index
    %c0_15 = arith.constant 0 : index
    %23 = vector.load %arg6[%c0_14, %c0_15] : memref<128x128xf32, #tpu.memory_space<vmem>>, vector<128x128xf32>
    %cst_16 = arith.constant dense<0.000000e+00> : vector<8x128xf32>
    %24 = tpu.matmul %22, %23, %cst_16 {dimension_numbers = #tpu.dot_dimension_numbers<[1], [0], [0], [1], [0, 0, 1, 1], [], []>} : vector<8x128xf32>, vector<128x128xf32>, vector<8x128xf32> -> vector<8x128xf32>
    %c0_17 = arith.constant 0 : index
    %c0_18 = arith.constant 0 : index
    %25 = vector.load %arg7[%c0_17, %c0_18] : memref<1x128xf32, #tpu.memory_space<vmem>>, vector<1x128xf32>
    %26 = vector.broadcast %25 : vector<1x128xf32> to vector<8x128xf32>
    %27 = arith.addf %24, %26 : vector<8x128xf32>
    %cst_19 = arith.constant 0.000000e+00 : f32
    %28 = vector.broadcast %cst_19 : f32 to vector<8x128xf32>
    %29 = arith.cmpf oge, %27, %28 : vector<8x128xf32>
    %cst_20 = arith.constant 0.00999999977 : f32
    %30 = vector.broadcast %cst_20 : f32 to vector<8x128xf32>
    %31 = arith.mulf %30, %27 : vector<8x128xf32>
    %32 = arith.select %29, %27, %31 : vector<8x128xi1>, vector<8x128xf32>
    %c0_21 = arith.constant 0 : index
    %c0_22 = arith.constant 0 : index
    %33 = vector.load %arg8[%c0_21, %c0_22] : memref<8x128xf32, #tpu.memory_space<vmem>>, vector<8x128xf32>
    tpu.vector_store %arg8[%c0_21, %c0_22], %32 {strides = array<i32>} : memref<8x128xf32, #tpu.memory_space<vmem>>, vector<8x128xf32>,
    return
  }
  func.func @transform_0(%arg0: i32) -> (i32, i32) {
    %c0_i32 = arith.constant 0 : i32
    %c0_i32_0 = arith.constant 0 : i32
    return %arg0, %c0_i32 : i32, i32
  }
  func.func @transform_1(%arg0: i32) -> (i32, i32) {
    %c0_i32 = arith.constant 0 : i32
    %c0_i32_0 = arith.constant 0 : i32
    %c0_i32_1 = arith.constant 0 : i32
    return %c0_i32, %c0_i32_0 : i32, i32
  }
  func.func @transform_2(%arg0: i32) -> (i32, i32) {
    %c0_i32 = arith.constant 0 : i32
    %c0_i32_0 = arith.constant 0 : i32
    %c0_i32_1 = arith.constant 0 : i32
    return %c0_i32, %c0_i32_0 : i32, i32
  }
  func.func @transform_3(%arg0: i32) -> (i32, i32) {
    %c0_i32 = arith.constant 0 : i32
    %c0_i32_0 = arith.constant 0 : i32
    %c0_i32_1 = arith.constant 0 : i32
    return %c0_i32, %c0_i32_0 : i32, i32
  }
  func.func @transform_4(%arg0: i32) -> (i32, i32) {
    %c0_i32 = arith.constant 0 : i32
    %c0_i32_0 = arith.constant 0 : i32
    %c0_i32_1 = arith.constant 0 : i32
    return %c0_i32, %c0_i32_0 : i32, i32
  }
  func.func @transform_5(%arg0: i32) -> (i32, i32) {
    %c0_i32 = arith.constant 0 : i32
    %c0_i32_0 = arith.constant 0 : i32
    %c0_i32_1 = arith.constant 0 : i32
    return %c0_i32, %c0_i32_0 : i32, i32
  }
  func.func @transform_6(%arg0: i32) -> (i32, i32) {
    %c0_i32 = arith.constant 0 : i32
    %c0_i32_0 = arith.constant 0 : i32
    %c0_i32_1 = arith.constant 0 : i32
    return %c0_i32, %c0_i32_0 : i32, i32
  }
  func.func @transform_7(%arg0: i32) -> (i32, i32) {
    %c0_i32 = arith.constant 0 : i32
    %c0_i32_0 = arith.constant 0 : i32
    return %arg0, %c0_i32 : i32, i32
  }
}

</mosaic_0001>

<bundles_post_ra>
// kernel: encoder_forward.1
= control target key start
LH: loop header
LB: loop body
LE: loop exit
PB: predicated region body
PF: predicated region fallthrough
CT: control target
= control target key end

     0   :  { %12 = vsyncpa [#allocation3], 0  ;;  %s1818_s0 = inlined_call_operand.hbm [shape: f32[8,784], index: 0, kind: input, shape index: {}]   ;;  %s1819_s1 = inlined_call_operand.hbm [shape: bf16[784,256], index: 1, kind: input, shape index: {}]   ;;  %s1820_s2 = inlined_call_operand.vmem [shape: f32[1,256], index: 2, kind: input, shape index: {}]   ;;  %s1821_s3 = inlined_call_operand.hbm [shape: bf16[256,128], index: 3, kind: input, shape index: {}]   ;;  %s1822_s4 = inlined_call_operand.vmem [shape: f32[1,128], index: 4, kind: input, shape index: {}]   ;;  %s1823_s5 = inlined_call_operand.hbm [shape: f32[128,128], index: 5, kind: input, shape index: {}]   ;;  %s1824_s6 = inlined_call_operand.vmem [shape: f32[1,128], index: 6, kind: input, shape index: {}]   ;;  %s1825_s7 = inlined_call_operand.hbm [shape: f32[8,128], index: 7, kind: output, shape index: {}]  }
   0x1   :  { %13 = vsyncpa [#allocation6], 0 }
   0x2   :  { %14 = vsyncpa [#allocation9], 0 }
   0x3   :  { %15 = vsyncpa [#allocation4], 0  ;;  %s1682_s24 = smov [#allocation5]   ;;  %s1564_s28 = scalar_lea.hbm %s1819_s1, 12544 }
   0x4   :  { %s31_s25 = sshll.u32 %s1682_s24, 4  ;;  %p1565_p0 = scmp.ne.s32.totalorder %s1819_s1, %s1564_s28  ;;  %s32_s25 = int_to_ptr.vmem [resolvable:$true] %s31_s25 }
   0x5   :  { %p1568_p1 = scmp.lt.u32.totalorder %s1564_s28, %s1819_s1 }
   0x7   :  { %p1570_p2 = pnand %p1568_p1, %p1565_p0 }
   0x9   :  { %1573 = shalt.err (!%p1570_p2)
}
   0xa   :  { %s1574_s10 = scalar_lea.vmem %s32_s25, 12544  ;;  %p1579_p4 = scmp.lt.s32.totalorder %s32_s25, %s32_s25 }
   0xb   :  { %p1575_p3 = scmp.ne.s32.totalorder %s32_s25, %s1574_s10  ;;  %p1580_p5 = scmp.lt.s32.totalorder %s1574_s10, %s1574_s10 }
   0xd   :  { %p1581_p6 = por %p1580_p5, %p1579_p4 }
   0xf   :  { %p1582_p7 = pnand %p1581_p6, %p1575_p3 }
  0x11   :  { %1585 = shalt.err (!%p1582_p7)
}
  0x12   :  { %s1683_s11 = smov 128   ;;  %s1684_s12 = smov 8  }
  0x13   :  { %37 = dma.hbm_to_vmem [thread:$0]  %s1819_s1, 12544, %s32_s25, [#allocation6], %s1683_s11, %s1683_s11, %s1684_s12  }
  0x14   :  { %s1685_s15 = smov [#allocation2]   ;;  %s1686_s17 = smov [#allocation7]  }
  0x15   :  { %s22_s16 = sshll.u32 %s1685_s15, 4  ;;  %s45_s18 = sshll.u32 %s1686_s17, 4  ;;  %s23_s16 = int_to_ptr.vmem [resolvable:$true] %s22_s16  ;;  %s46_s18 = int_to_ptr.vmem [resolvable:$true] %s45_s18 }
  0x16   :  { %s1586_s21 = scalar_lea.hbm %s1818_s0, 896 }
  0x17   :  { %p1587_p8 = scmp.ne.s32.totalorder %s1818_s0, %s1586_s21  ;;  %p1590_p9 = scmp.lt.u32.totalorder %s1586_s21, %s1818_s0 }
  0x19   :  { %p1592_p10 = pnand %p1590_p9, %p1587_p8 }
  0x1b   :  { %1595 = shalt.err (!%p1592_p10)
}
  0x1c   :  { %s1596_s1 = scalar_lea.vmem %s23_s16, 896  ;;  %p1601_p12 = scmp.lt.s32.totalorder %s23_s16, %s23_s16 }
  0x1d   :  { %p1597_p11 = scmp.ne.s32.totalorder %s23_s16, %s1596_s1  ;;  %p1602_p13 = scmp.lt.s32.totalorder %s1596_s1, %s1596_s1 }
  0x1f   :  { %p1603_p0 = por %p1602_p13, %p1601_p12 }
  0x21   :  { %p1604_p1 = pnand %p1603_p0, %p1597_p11 }
  0x23   :  { %1607 = shalt.err (!%p1604_p1)
}
  0x24   :  { %25 = dma.hbm_to_vmem [thread:$0]  %s1818_s0, 896, %s23_s16, [#allocation3]  }
  0x25   :  { %s1608_s30 = scalar_lea.hbm %s1821_s3, 2048 }
  0x26   :  { %p1609_p2 = scmp.ne.s32.totalorder %s1821_s3, %s1608_s30  ;;  %p1612_p3 = scmp.lt.u32.totalorder %s1608_s30, %s1821_s3 }
  0x28   :  { %p1614_p4 = pnand %p1612_p3, %p1609_p2 }
  0x2a   :  { %1617 = shalt.err (!%p1614_p4)
}
  0x2b   :  { %s1618_s14 = scalar_lea.vmem %s46_s18, 2048  ;;  %p1623_p6 = scmp.lt.s32.totalorder %s46_s18, %s46_s18 }
  0x2c   :  { %p1619_p5 = scmp.ne.s32.totalorder %s46_s18, %s1618_s14  ;;  %p1624_p7 = scmp.lt.s32.totalorder %s1618_s14, %s1618_s14 }
  0x2e   :  { %p1625_p8 = por %p1624_p7, %p1623_p6 }
  0x30   :  { %p1626_p9 = pnand %p1625_p8, %p1619_p5 }
  0x32   :  { %1629 = shalt.err (!%p1626_p9)
}
  0x33   :  { %s1687_s0 = smov 64   ;;  %s1688_s15 = smov 4  }
  0x34   :  { %51 = dma.hbm_to_vmem [thread:$0]  %s1821_s3, 2048, %s46_s18, [#allocation6], %s1687_s0, %s1687_s0, %s1688_s15  }
  0x35   :  { %s1689_s19 = smov [#allocation8]   ;;  %s1630_s23 = scalar_lea.hbm %s1823_s5, 2048 }
  0x36   :  { %s59_s20 = sshll.u32 %s1689_s19, 4  ;;  %p1631_p10 = scmp.ne.s32.totalorder %s1823_s5, %s1630_s23  ;;  %s60_s20 = int_to_ptr.vmem [resolvable:$true] %s59_s20 }
  0x37   :  { %p1634_p11 = scmp.lt.u32.totalorder %s1630_s23, %s1823_s5 }
  0x39   :  { %p1636_p12 = pnand %p1634_p11, %p1631_p10 }
  0x3b   :  { %1639 = shalt.err (!%p1636_p12)
}
  0x3c   :  { %s1640_s27 = scalar_lea.vmem %s60_s20, 2048  ;;  %p1645_p0 = scmp.lt.s32.totalorder %s60_s20, %s60_s20 }
  0x3d   :  { %p1641_p13 = scmp.ne.s32.totalorder %s60_s20, %s1640_s27  ;;  %p1646_p1 = scmp.lt.s32.totalorder %s1640_s27, %s1640_s27 }
  0x3f   :  { %p1647_p2 = por %p1646_p1, %p1645_p0 }
  0x41   :  { %p1648_p3 = pnand %p1647_p2, %p1641_p13 }
  0x43   :  { %1651 = shalt.err (!%p1648_p3)
}
  0x44   :  { %65 = dma.hbm_to_vmem [thread:$0]  %s1823_s5, 2048, %s60_s20, [#allocation9], %s1683_s11, %s1683_s11, %s1684_s12  }
  0x45   :  { %1674 = dma.done.wait [#allocation3], 896  }
  0x46   :  { %1675 = vsyncadd [#allocation3], 4294966400 }
  0x47   :  { %1676 = dma.done.wait [#allocation6], 14592  }
  0x48   :  { %1677 = vsyncadd [#allocation6], 4294952704 }
  0x49   :  { %1678 = dma.done.wait [#allocation9], 2048  }
  0x4a   :  { %1679 = vsyncadd [#allocation9], 4294965248  ;;  %v1401_v0 = vld [vmem:[#allocation5 + $0x104] ss:$8 sps:$4 sm:$0xff]   ;;  %v1403_v1 = vld [vmem:[#allocation5 + $0x100] ss:$8 sps:$4 sm:$0xff]  }
  0x4b   :  { %740 = vmatprep.subr.bf16.mxu0 %v1401_v0  ;;  %v1404_v2 = vld [vmem:[#allocation5 + $0x114] ss:$8 sps:$4 sm:$0xff]   ;;  %v1406_v3 = vld [vmem:[#allocation5 + $0x110] ss:$8 sps:$4 sm:$0xff]   ;;  %v1407_v4 = vld [vmem:[#allocation5 + $0x124] ss:$8 sps:$4 sm:$0xff]  }
  0x4c   :  { %741 = vmatpush1.bf16.msra.mxu0 %v1403_v1  ;;  %v1409_v5 = vld [vmem:[#allocation5 + $0x120] ss:$8 sps:$4 sm:$0xff]   ;;  %v1410_v6 = vld [vmem:[#allocation5 + $0x134] ss:$8 sps:$4 sm:$0xff]   ;;  %v1412_v7 = vld [vmem:[#allocation5 + $0x130] ss:$8 sps:$4 sm:$0xff]  }
  0x4d   :  { %742 = vmatprep.subr.bf16.mxu0 %v1404_v2  ;;  %v1413_v8 = vld [vmem:[#allocation5 + $0x144] ss:$8 sps:$4 sm:$0xff]   ;;  %v1415_v9 = vld [vmem:[#allocation5 + $0x140] ss:$8 sps:$4 sm:$0xff]   ;;  %v1416_v10 = vld [vmem:[#allocation5 + $0x154] ss:$8 sps:$4 sm:$0xff]  }
  0x4e   :  { %v1418_v11 = vld [vmem:[#allocation5 + $0x150] ss:$8 sps:$4 sm:$0xff]   ;;  %v1443_v12 = vld [vmem:[#allocation5 + $0x4] ss:$8 sps:$4 sm:$0xff]   ;;  %v1445_v13 = vld [vmem:[#allocation5] ss:$8 sps:$4 sm:$0xff]  }
  0x4f   :  { %v1419_v14 = vld [vmem:[#allocation5 + $0x164] ss:$8 sps:$4 sm:$0xff]   ;;  %699 = vmatprep.subr.bf16.mxu1 %v1443_v12  ;;  %v1449_v15 = vld [vmem:[#allocation5 + $0x14] ss:$8 sps:$4 sm:$0xff]   ;;  %v1451_v16 = vld [vmem:[#allocation5 + $0x10] ss:$8 sps:$4 sm:$0xff]  }
  0x50   :  { %743 = vmatpush1.bf16.msra.mxu0 %v1406_v3  ;;  %700 = vmatpush1.bf16.msra.mxu1 %v1445_v13  ;;  %v1421_v17 = vld [vmem:[#allocation5 + $0x160] ss:$8 sps:$4 sm:$0xff]   ;;  %v1422_v18 = vld [vmem:[#allocation5 + $0x174] ss:$8 sps:$4 sm:$0xff]   ;;  %v1455_v19 = vld [vmem:[#allocation5 + $0x24] ss:$8 sps:$4 sm:$0xff]  }
  0x51   :  { %744 = vmatprep.subr.bf16.mxu0 %v1407_v4  ;;  %701 = vmatprep.subr.bf16.mxu1 %v1449_v15  ;;  %v84_v20 = vld [vmem:[#allocation2 + $0x18] sm:$0xff]  ;;  %v1424_v23 = vld [vmem:[#allocation5 + $0x170] ss:$8 sps:$4 sm:$0xff]   ;;  %v1461_v25 = vld [vmem:[#allocation5 + $0x34] ss:$8 sps:$4 sm:$0xff]   ;;  %vm695_vm0 = vcmask 130048  }
  0x52   :  { %v1457_v21 = vld [vmem:[#allocation5 + $0x20] ss:$8 sps:$4 sm:$0xff]   ;;  %v91_v22 = vpack.c.bf16 %v84_v20, %v84_v20  ;;  %v1425_v24 = vld [vmem:[#allocation5 + $0x184] ss:$8 sps:$4 sm:$0xff]   ;;  %v1463_v27 = vld [vmem:[#allocation5 + $0x30] ss:$8 sps:$4 sm:$0xff]  }
  0x53   :  { %v1427_v26 = vld [vmem:[#allocation5 + $0x180] ss:$8 sps:$4 sm:$0xff]   ;;  %v1467_v28 = vld [vmem:[#allocation5 + $0x44] ss:$8 sps:$4 sm:$0xff]   ;;  %v1428_v29 = vld [vmem:[#allocation5 + $0x194] ss:$8 sps:$4 sm:$0xff]  }
  0x54   :  { %745 = vmatpush1.bf16.msra.mxu0 %v1409_v5  ;;  %702 = vmatpush1.bf16.msra.mxu1 %v1451_v16  ;;  %v1430_v30 = vld [vmem:[#allocation5 + $0x190] ss:$8 sps:$4 sm:$0xff]   ;;  %v1469_v31 = vld [vmem:[#allocation5 + $0x40] ss:$8 sps:$4 sm:$0xff]   ;;  %v1473_v32 = vld [vmem:[#allocation5 + $0x54] ss:$8 sps:$4 sm:$0xff]  }
  0x55   :  { %746 = vmatprep.subr.bf16.mxu0 %v1410_v6  ;;  %703 = vmatprep.subr.bf16.mxu1 %v1455_v19  ;;  %v1431_v33 = vld [vmem:[#allocation5 + $0x1a4] ss:$8 sps:$4 sm:$0xff]   ;;  %v1433_v34 = vld [vmem:[#allocation5 + $0x1a0] ss:$8 sps:$4 sm:$0xff]   ;;  %v1475_v35 = vld [vmem:[#allocation5 + $0x50] ss:$8 sps:$4 sm:$0xff]  }
  0x56   :  { %772 = vmatprep.mubr.bf16.mxu0 %v91_v22  ;;  %v1479_v36 = vld [vmem:[#allocation5 + $0x64] ss:$8 sps:$4 sm:$0xff]   ;;  %v1434_v37 = vld [vmem:[#allocation5 + $0x1b4] ss:$8 sps:$4 sm:$0xff]   ;;  %v1436_v38 = vld [vmem:[#allocation5 + $0x1b0] ss:$8 sps:$4 sm:$0xff]  }
  0x57   :  { %v1481_v39 = vld [vmem:[#allocation5 + $0x60] ss:$8 sps:$4 sm:$0xff]   ;;  %v1485_v40 = vld [vmem:[#allocation5 + $0x74] ss:$8 sps:$4 sm:$0xff]   ;;  %v1437_v41 = vld [vmem:[#allocation5 + $0x1c4] ss:$8 sps:$4 sm:$0xff]  }
  0x58   :  { %747 = vmatpush1.bf16.msra.mxu0 %v1412_v7  ;;  %704 = vmatpush1.bf16.msra.mxu1 %v1457_v21  ;;  %v1439_v42 = vld [vmem:[#allocation5 + $0x1c0] ss:$8 sps:$4 sm:$0xff]   ;;  %v1487_v43 = vld [vmem:[#allocation5 + $0x70] ss:$8 sps:$4 sm:$0xff]   ;;  %v1491_v44 = vld [vmem:[#allocation5 + $0x84] ss:$8 sps:$4 sm:$0xff]  }
  0x59   :  { %748 = vmatprep.subr.bf16.mxu0 %v1413_v8  ;;  %705 = vmatprep.subr.bf16.mxu1 %v1461_v25  ;;  %v1440_v45 = vld [vmem:[#allocation5 + $0x1d4] ss:$8 sps:$4 sm:$0xff]   ;;  %v1442_v46 = vld [vmem:[#allocation5 + $0x1d0] ss:$8 sps:$4 sm:$0xff]   ;;  %v1493_v47 = vld [vmem:[#allocation5 + $0x80] ss:$8 sps:$4 sm:$0xff]  }
  0x5a   :  { %v1497_v48 = vld [vmem:[#allocation5 + $0x94] ss:$8 sps:$4 sm:$0xff]   ;;  %v1446_v49 = vld [vmem:[#allocation5 + $0x1e4] ss:$8 sps:$4 sm:$0xff]   ;;  %v1448_v50 = vld [vmem:[#allocation5 + $0x1e0] ss:$8 sps:$4 sm:$0xff]  }
  0x5b   :  { %v1499_v51 = vld [vmem:[#allocation5 + $0x90] ss:$8 sps:$4 sm:$0xff]   ;;  %v1503_v52 = vld [vmem:[#allocation5 + $0xa4] ss:$8 sps:$4 sm:$0xff]   ;;  %v1452_v53 = vld [vmem:[#allocation5 + $0x1f4] ss:$8 sps:$4 sm:$0xff]  }
  0x5c   :  { %749 = vmatpush1.bf16.msra.mxu0 %v1415_v9  ;;  %706 = vmatpush1.bf16.msra.mxu1 %v1463_v27  ;;  %v1454_v54 = vld [vmem:[#allocation5 + $0x1f0] ss:$8 sps:$4 sm:$0xff]   ;;  %v1505_v56 = vld [vmem:[#allocation5 + $0xa0] ss:$8 sps:$4 sm:$0xff]   ;;  %v1509_v57 = vld [vmem:[#allocation5 + $0xb4] ss:$8 sps:$4 sm:$0xff]  }
  0x5d   :  { %750 = vmatprep.subr.bf16.mxu0 %v1416_v10  ;;  %707 = vmatprep.subr.bf16.mxu1 %v1467_v28  ;;  %v83_v55 = vld [vmem:[#allocation2 + $0x10] sm:$0xff]  ;;  %v1460_v58 = vld [vmem:[#allocation5 + $0x204] ss:$8 sps:$4 sm:$0xff]   ;;  %v82_v61 = vld [vmem:[#allocation2 + $0x8] sm:$0xff]  ;;  %vm1692_vm3 = vmmov 0   ;;  %s1694_s30 = smov [#allocation10]  }
  0x5e   :  { %v90_v59 = vpack.c.bf16 %v83_v55, %v83_v55  ;;  %v1511_v60 = vld [vmem:[#allocation5 + $0xb0] ss:$8 sps:$4 sm:$0xff]   ;;  %v1458_v62 = vld [vmem:[#allocation5 + $0x200] ss:$8 sps:$4 sm:$0xff]   ;;  %v1515_v63 = vld [vmem:[#allocation5 + $0xc4] ss:$8 sps:$4 sm:$0xff]   ;;  %v89_v0 = vpack.c.bf16 %v82_v61, %v82_v61 }
  0x5f   :  { %v1466_v1 = vld [vmem:[#allocation5 + $0x214] ss:$8 sps:$4 sm:$0xff]   ;;  %v1517_v2 = vld [vmem:[#allocation5 + $0xc0] ss:$8 sps:$4 sm:$0xff]   ;;  %v1464_v4 = vld [vmem:[#allocation5 + $0x210] ss:$8 sps:$4 sm:$0xff]  }
  0x60   :  { %751 = vmatpush1.bf16.msra.mxu0 %v1418_v11  ;;  %708 = vmatpush1.bf16.msra.mxu1 %v1469_v31  ;;  %v86_v3 = vld [vmem:[#allocation2 + $0x28] sm:$0xff]  ;;  %v1472_v7 = vld [vmem:[#allocation5 + $0x224] ss:$8 sps:$4 sm:$0xff]   ;;  %v1470_v8 = vld [vmem:[#allocation5 + $0x220] ss:$8 sps:$4 sm:$0xff]   ;;  %s1152_s8 = sshll.u32 %s1694_s30, 4  ;;  %s1153_s8 = int_to_ptr.vmem [resolvable:$true] %s1152_s8 }
  0x61   :  { %752 = vmatprep.subr.bf16.mxu0 %v1419_v14  ;;  %709 = vmatprep.subr.bf16.mxu1 %v1473_v32  ;;  %v1521_v5 = vld [vmem:[#allocation5 + $0xd4] ss:$8 sps:$4 sm:$0xff]   ;;  %v93_v6 = vpack.c.bf16 %v86_v3, %v86_v3  ;;  %v1523_v9 = vld [vmem:[#allocation5 + $0xd0] ss:$8 sps:$4 sm:$0xff]   ;;  %v1527_v10 = vld [vmem:[#allocation5 + $0xe4] ss:$8 sps:$4 sm:$0xff]   ;;  %p1657_p5 = scmp.lt.s32.totalorder %s1153_s8, %s1153_s8 }
  0x62   :  { %731 = vmatprep.mubr.bf16.mxu1 %v89_v0  ;;  %v1478_v11 = vld [vmem:[#allocation5 + $0x234] ss:$8 sps:$4 sm:$0xff]   ;;  %v1476_v12 = vld [vmem:[#allocation5 + $0x230] ss:$8 sps:$4 sm:$0xff]   ;;  %v1529_v13 = vld [vmem:[#allocation5 + $0xe0] ss:$8 sps:$4 sm:$0xff]  }
  0x63   :  { %v1533_v14 = vld [vmem:[#allocation5 + $0xf4] ss:$8 sps:$4 sm:$0xff]   ;;  %v1484_v15 = vld [vmem:[#allocation5 + $0x244] ss:$8 sps:$4 sm:$0xff]   ;;  %v1535_v16 = vld [vmem:[#allocation5 + $0xf0] ss:$8 sps:$4 sm:$0xff]  }
  0x64   :  { %753 = vmatpush1.bf16.msra.mxu0 %v1421_v17  ;;  %710 = vmatpush1.bf16.msra.mxu1 %v1475_v35  ;;  %v81_v17 = vld [vmem:[#allocation2] sm:$0xff]  ;;  %v1490_v20 = vld [vmem:[#allocation5 + $0x254] ss:$8 sps:$4 sm:$0xff]   ;;  %v1500_v32 = vld [vmem:[#allocation5 + $0x270] ss:$8 sps:$4 sm:$0xff]  }
  0x65   :  { %754 = vmatprep.subr.bf16.mxu0 %v1422_v18  ;;  %711 = vmatprep.subr.bf16.mxu1 %v1479_v36  ;;  %v1482_v18 = vld [vmem:[#allocation5 + $0x240] ss:$8 sps:$4 sm:$0xff]   ;;  %v1544_v19 = vld [vmem:[#allocation5 + $0x304] ss:$8 sps:$4 sm:$0xff]   ;;  %v88_v21 = vpack.c.bf16 %v81_v17, %v81_v17  ;;  %v87_v27 = vld [vmem:[#allocation2 + $0x30] sm:$0xff] }
  0x66   :  { %v1542_v22 = vld [vmem:[#allocation5 + $0x300] ss:$8 sps:$4 sm:$0xff]   ;;  %v1496_v25 = vld [vmem:[#allocation5 + $0x264] ss:$8 sps:$4 sm:$0xff]   ;;  %v1549_v31 = vld [vmem:[#allocation7] sm:$0xff]  }
  0x67   :  { %v1494_v28 = vld [vmem:[#allocation5 + $0x260] ss:$8 sps:$4 sm:$0xff]   ;;  %v1551_v35 = vld [vmem:[#allocation7 + $0x8] sm:$0xff]  }
  0x68   :  { %755 = vmatpush1.bf16.msra.mxu0 %v1424_v23  ;;  %712 = vmatpush1.bf16.msra.mxu1 %v1481_v39  ;;  %v1488_v23 = vld [vmem:[#allocation5 + $0x250] ss:$8 sps:$4 sm:$0xff]   ;;  %v1506_v36 = vld [vmem:[#allocation5 + $0x280] ss:$8 sps:$4 sm:$0xff]  }
  0x69   :  { %756 = vmatprep.subr.bf16.mxu0 %v1425_v24  ;;  %713 = vmatprep.subr.bf16.mxu1 %v1485_v40  ;;  %v1548_v24 = vld [vmem:[#allocation7 + $0x40] sm:$0xff]   ;;  %v1553_v39 = vld [vmem:[#allocation7 + $0x10] sm:$0xff]   ;;  %v1554_v55 = vld [vmem:[#allocation7 + $0x58] sm:$0xff]  }
  0x6a   :  { %v1512_v40 = vld [vmem:[#allocation5 + $0x290] ss:$8 sps:$4 sm:$0xff]   ;;  %v1560_v61 = vld [vmem:[#allocation7 + $0x70] sm:$0xff]   ;;  %v1563_v0 = vld [vmem:[#allocation7 + $0x38] sm:$0xff]  }
  0x6c   :  { %757 = vmatpush1.bf16.msra.mxu0 %v1427_v26  ;;  %714 = vmatpush1.bf16.msra.mxu1 %v1487_v43  ;;  %v1690_v26 = vmov 0   ;;  %v1526_v43 = vld [vmem:[#allocation5 + $0x2b4] ss:$8 sps:$4 sm:$0xff]  }
  0x6d   :  { %758 = vmatprep.subr.bf16.mxu0 %v1428_v29  ;;  %715 = vmatprep.subr.bf16.mxu1 %v1491_v44  ;;  %v1502_v29 = vld [vmem:[#allocation5 + $0x274] ss:$8 sps:$4 sm:$0xff]   ;;  %v1524_v44 = vld [vmem:[#allocation5 + $0x2b0] ss:$8 sps:$4 sm:$0xff]  }
  0x70   :  { %759 = vmatpush1.bf16.msra.mxu0 %v1430_v30  ;;  %716 = vmatpush1.bf16.msra.mxu1 %v1493_v47  ;;  %v94_v30 = vpack.c.bf16 %v87_v27, %v87_v27  ;;  %v1538_v47 = vld [vmem:[#allocation5 + $0x2d4] ss:$8 sps:$4 sm:$0xff]  }
  0x71   :  { %760 = vmatprep.subr.bf16.mxu0 %v1431_v33  ;;  %717 = vmatprep.subr.bf16.mxu1 %v1497_v48  ;;  %v1550_v33 = vld [vmem:[#allocation7 + $0x48] sm:$0xff]  }
  0x72   :  { %v1536_v48 = vld [vmem:[#allocation5 + $0x2d0] ss:$8 sps:$4 sm:$0xff]  }
  0x74   :  { %761 = vmatpush1.bf16.msra.mxu0 %v1433_v34  ;;  %718 = vmatpush1.bf16.msra.mxu1 %v1499_v51  ;;  %v1508_v34 = vld [vmem:[#allocation5 + $0x284] ss:$8 sps:$4 sm:$0xff]   ;;  %v1547_v51 = vld [vmem:[#allocation5 + $0x2f4] ss:$8 sps:$4 sm:$0xff]  }
  0x75   :  { %762 = vmatprep.subr.bf16.mxu0 %v1434_v37  ;;  %719 = vmatprep.subr.bf16.mxu1 %v1503_v52  ;;  %v1552_v37 = vld [vmem:[#allocation7 + $0x50] sm:$0xff]   ;;  %v1545_v52 = vld [vmem:[#allocation5 + $0x2f0] ss:$8 sps:$4 sm:$0xff]  }
  0x78   :  { %763 = vmatpush1.bf16.msra.mxu0 %v1436_v38  ;;  %720 = vmatpush1.bf16.msra.mxu1 %v1505_v56  ;;  %v1514_v38 = vld [vmem:[#allocation5 + $0x294] ss:$8 sps:$4 sm:$0xff]   ;;  %v1555_v56 = vld [vmem:[#allocation7 + $0x18] sm:$0xff]  }
  0x79   :  { %764 = vmatprep.subr.bf16.mxu0 %v1437_v41  ;;  %721 = vmatprep.subr.bf16.mxu1 %v1509_v57  ;;  %v1520_v41 = vld [vmem:[#allocation5 + $0x2a4] ss:$8 sps:$4 sm:$0xff]   ;;  %v1556_v57 = vld [vmem:[#allocation7 + $0x60] sm:$0xff]  }
  0x7c   :  { %765 = vmatpush1.bf16.msra.mxu0 %v1439_v42  ;;  %722 = vmatpush1.bf16.msra.mxu1 %v1511_v60  ;;  %v1518_v42 = vld [vmem:[#allocation5 + $0x2a0] ss:$8 sps:$4 sm:$0xff]   ;;  %v1559_v60 = vld [vmem:[#allocation7 + $0x28] sm:$0xff]  }
  0x7d   :  { %766 = vmatprep.subr.bf16.mxu0 %v1440_v45  ;;  %723 = vmatprep.subr.bf16.mxu1 %v1515_v63  ;;  %v1532_v45 = vld [vmem:[#allocation5 + $0x2c4] ss:$8 sps:$4 sm:$0xff]  }
  0x7e   :  { %v1562_v63 = vld [vmem:[#allocation7 + $0x78] sm:$0xff]  }
  0x80   :  { %767 = vmatpush1.bf16.msra.mxu0 %v1442_v46  ;;  %724 = vmatpush1.bf16.msra.mxu1 %v1517_v2  ;;  %v1530_v46 = vld [vmem:[#allocation5 + $0x2c0] ss:$8 sps:$4 sm:$0xff]  }
  0x81   :  { %768 = vmatprep.subr.bf16.mxu0 %v1446_v49  ;;  %725 = vmatprep.subr.bf16.mxu1 %v1521_v5  ;;  %v1541_v49 = vld [vmem:[#allocation5 + $0x2e4] ss:$8 sps:$4 sm:$0xff]  }
  0x84   :  { %769 = vmatpush1.bf16.msra.mxu0 %v1448_v50  ;;  %726 = vmatpush1.bf16.msra.mxu1 %v1523_v9  ;;  %v1539_v50 = vld [vmem:[#allocation5 + $0x2e0] ss:$8 sps:$4 sm:$0xff]  }
  0x85   :  { %770 = vmatprep.subr.bf16.mxu0 %v1452_v53  ;;  %727 = vmatprep.subr.bf16.mxu1 %v1527_v10  ;;  %v85_v53 = vld [vmem:[#allocation2 + $0x20] sm:$0xff]  ;;  %v195_v10 = vlaneseq }
  0x88   :  { %771 = vmatpush1.bf16.msra.mxu0 %v1454_v54  ;;  %728 = vmatpush1.bf16.msra.mxu1 %v1529_v13  ;;  %v92_v54 = vpack.c.bf16 %v85_v53, %v85_v53  ;;  %v193_v13 = vld [vmem:[%s1820_s2] sm:$0x3] }
  0x89   :  { %781 = vmatprep.subr.bf16.mxu0 %v1460_v58  ;;  %729 = vmatprep.subr.bf16.mxu1 %v1533_v14  ;;  %v1557_v58 = vld [vmem:[#allocation7 + $0x20] sm:$0xff]  }
  0x8b   :  { %773 = vmatmul.mubr.bf16.vlgmr.msra.gmra.mrb[0].mxu0 %v90_v59  ;;  %v1558_v59 = vld [vmem:[#allocation7 + $0x68] sm:$0xff]  }
  0x8c   :  { %782 = vmatpush1.bf16.msra.mxu0 %v1458_v62  ;;  %813 = vmatprep.mubr.bf16.mxu0 %v93_v6  ;;  %v1561_v62 = vld [vmem:[#allocation7 + $0x30] sm:$0xff]  }
  0x8d   :  { %783 = vmatprep.subr.bf16.mxu0 %v1466_v1  ;;  %730 = vmatpush1.bf16.msra.mxu1 %v1535_v16  ;;  %v1691_v1 = vmov 0.0|0.0  }
  0x8e   :  { %822 = vmatprep.subr.bf16.mxu1 %v1544_v19 }
  0x90   :  { %784 = vmatpush1.bf16.msra.mxu0 %v1464_v4  ;;  %732 = vmatmul.mubr.bf16.vlgmr.msra.gmra.mrb[0].mxu1 %v88_v21 }
  0x91   :  { %785 = vmatprep.subr.bf16.mxu0 %v1472_v7  ;;  %823 = vmatpush1.bf16.msra.mxu1 %v1542_v22 }
  0x92   :  { %854 = vmatprep.mubr.bf16.mxu1 %v1690_v26  ;;  %1280 = vmatprep.subr.bf16.mxu1 %v1548_v24 }
  0x94   :  { %786 = vmatpush1.bf16.msra.mxu0 %v1470_v8 }
  0x95   :  { %787 = vmatprep.subr.bf16.mxu0 %v1478_v11  ;;  %v196_v11 = vshrl.u32 %v195_v10, 7 }
  0x97   :  { %v201_v14 = vsub.s32 1, %v196_v11 }
  0x98   :  { %788 = vmatpush1.bf16.msra.mxu0 %v1476_v12  ;;  %1261 = vmatmul.mubr.msk.bf16.vlgmr.msra.gmra.mrb[4].mxu1 %vm695_vm0, %v94_v30  ;;  %v197_v12 = vsub.s32 0, %v196_v11  ;;  %v1050_v30 = vld [vmem:[#allocation8 + $0x8] sm:$0xff] }
  0x99   :  { %789 = vmatprep.subr.bf16.mxu0 %v1484_v15  ;;  %1281 = vmatpush3.bf16.msra.mxu1 %v1549_v31  ;;  %v202_v16 = vrot.slane %v193_v13, %v201_v14 }
  0x9a   :  { %1282 = vmatprep.subr.bf16.mxu1 %v1550_v33  ;;  %v198_v15 = vrot.slane %v193_v13, %v197_v12 }
  0x9c   :  { %790 = vmatpush1.bf16.msra.mxu0 %v1482_v18 }
  0x9d   :  { %791 = vmatprep.subr.bf16.mxu0 %v1490_v20  ;;  %1283 = vmatpush3.bf16.msra.mxu1 %v1551_v35 }
  0x9e   :  { %1284 = vmatprep.subr.bf16.mxu1 %v1552_v37  ;;  %v1052_v37 = vld [vmem:[#allocation8 + $0x18] sm:$0xff] }
  0xa0   :  { %792 = vmatpush1.bf16.msra.mxu0 %v1488_v23 }
  0xa1   :  { %793 = vmatprep.subr.bf16.mxu0 %v1496_v25  ;;  %1285 = vmatpush3.bf16.msra.mxu1 %v1553_v39  ;;  %v1053_v39 = vld [vmem:[#allocation8 + $0x20] sm:$0xff] }
  0xa2   :  { %1286 = vmatprep.subr.bf16.mxu1 %v1554_v55  ;;  %v1064_v55 = vld [vmem:[#allocation8 + $0x78] sm:$0xff] }
  0xa4   :  { %794 = vmatpush1.bf16.msra.mxu0 %v1494_v28 }
  0xa5   :  { %795 = vmatprep.subr.bf16.mxu0 %v1502_v29  ;;  %1287 = vmatpush3.bf16.msra.mxu1 %v1555_v56  ;;  %v1049_v29 = vld [vmem:[#allocation8] sm:$0xff] }
  0xa6   :  { %1288 = vmatprep.subr.bf16.mxu1 %v1556_v57  ;;  %v1693_v57 = vmov 0.0  }
  0xa8   :  { %796 = vmatpush1.bf16.msra.mxu0 %v1500_v32 }
  0xa9   :  { %797 = vmatprep.subr.bf16.mxu0 %v1508_v34  ;;  %1289 = vmatpush3.bf16.msra.mxu1 %v1557_v58  ;;  %v1355_v34 = vpack.c.bf16 %v1050_v30, %v1049_v29 }
  0xaa   :  { %1290 = vmatprep.subr.bf16.mxu1 %v1558_v59  ;;  %v1262_v59 = vld [vmem:[%s1822_s4] ss:$0 sm:$0xff]  ;;  %s1652_s4 = scalar_lea.vmem %s1153_s8, 128 }
  0xab   :  { %p1653_p4 = scmp.ne.s32.totalorder %s1153_s8, %s1652_s4  ;;  %p1658_p6 = scmp.lt.s32.totalorder %s1652_s4, %s1652_s4 }
  0xac   :  { %798 = vmatpush1.bf16.msra.mxu0 %v1506_v36  ;;  %v1051_v36 = vld [vmem:[#allocation8 + $0x10] sm:$0xff] }
  0xad   :  { %799 = vmatprep.subr.bf16.mxu0 %v1514_v38  ;;  %1291 = vmatpush3.bf16.msra.mxu1 %v1559_v60  ;;  %v1358_v38 = vpack.c.bf16 %v1052_v37, %v1051_v36  ;;  %p1659_p7 = por %p1658_p6, %p1657_p5 }
  0xae   :  { %1292 = vmatprep.subr.bf16.mxu1 %v1560_v61 }
  0xaf   :  { %p1660_p8 = pnand %p1659_p7, %p1653_p4 }
  0xb0   :  { %800 = vmatpush1.bf16.msra.mxu0 %v1512_v40  ;;  %v1054_v40 = vld [vmem:[#allocation8 + $0x28] sm:$0xff] }
  0xb1   :  { %801 = vmatprep.subr.bf16.mxu0 %v1520_v41  ;;  %1293 = vmatpush3.bf16.msra.mxu1 %v1561_v62  ;;  %v1361_v41 = vpack.c.bf16 %v1054_v40, %v1053_v39 }
  0xb2   :  { %1294 = vmatprep.subr.bf16.mxu1 %v1562_v63 }
  0xb4   :  { %802 = vmatpush1.bf16.msra.mxu0 %v1518_v42  ;;  %v1055_v42 = vld [vmem:[#allocation8 + $0x30] sm:$0xff] }
  0xb5   :  { %803 = vmatprep.subr.bf16.mxu0 %v1526_v43  ;;  %1295 = vmatpush3.bf16.msra.mxu1 %v1563_v0  ;;  %v1056_v43 = vld [vmem:[#allocation8 + $0x38] sm:$0xff] }
  0xb6   :  { %1354 = vmatprep.subr.bf16.mxu1 %v1691_v1 }
  0xb8   :  { %804 = vmatpush1.bf16.msra.mxu0 %v1524_v44  ;;  %v1364_v44 = vpack.c.bf16 %v1056_v43, %v1055_v42 }
  0xb9   :  { %805 = vmatprep.subr.bf16.mxu0 %v1532_v45  ;;  %v1057_v45 = vld [vmem:[#allocation8 + $0x40] sm:$0xff] }
  0xbc   :  { %806 = vmatpush1.bf16.msra.mxu0 %v1530_v46  ;;  %v1058_v46 = vld [vmem:[#allocation8 + $0x48] sm:$0xff] }
  0xbd   :  { %807 = vmatprep.subr.bf16.mxu0 %v1538_v47  ;;  %v1367_v47 = vpack.c.bf16 %v1058_v46, %v1057_v45 }
  0xc0   :  { %808 = vmatpush1.bf16.msra.mxu0 %v1536_v48  ;;  %v1059_v48 = vld [vmem:[#allocation8 + $0x50] sm:$0xff] }
  0xc1   :  { %809 = vmatprep.subr.bf16.mxu0 %v1541_v49  ;;  %v1060_v49 = vld [vmem:[#allocation8 + $0x58] sm:$0xff] }
  0xc4   :  { %810 = vmatpush1.bf16.msra.mxu0 %v1539_v50  ;;  %v1370_v50 = vpack.c.bf16 %v1060_v49, %v1059_v48 }
  0xc5   :  { %811 = vmatprep.subr.bf16.mxu0 %v1547_v51  ;;  %v1061_v51 = vld [vmem:[#allocation8 + $0x60] sm:$0xff] }
  0xc8   :  { %812 = vmatpush1.bf16.msra.mxu0 %v1545_v52  ;;  %v1062_v52 = vld [vmem:[#allocation8 + $0x68] sm:$0xff] }
  0xc9   :  { %v1373_v53 = vpack.c.bf16 %v1062_v52, %v1061_v51 }
  0xcb   :  { %814 = vmatmul.mubr.bf16.vlgmr.msra.gmra.mrb[0].mxu0 %v92_v54  ;;  %v1063_v54 = vld [vmem:[#allocation8 + $0x70] sm:$0xff] }
  0xcc   :  { %v1376_v56 = vpack.c.bf16 %v1064_v55, %v1063_v54 }
 0x163   :  { %v733_v2 = vpop.f32.mrb[0].mxu1 }
 0x164   :  { %v735_v3 = vpop.f32.mrb[1].mxu1  ;;  %v734_v17 = vadd.f32 %v733_v2, %v198_v15 }
 0x165   :  { %v737_v4 = vpop.f32.mrb[2].mxu1  ;;  %v736_v18 = vadd.f32 %v735_v3, %v202_v16  ;;  %v1279_v3 = vld [vmem:[%s1824_s6] ss:$0 sm:$0xff] }
 0x166   :  { %v738_v5 = vpop.f32.mrb[3].mxu1 }
 0x16b   :  { %v856_v6 = vpop.f32.mrb[4].mxu1 }
 0x16c   :  { %v858_v7 = vpop.f32.mrb[5].mxu1 }
 0x16d   :  { %v860_v8 = vpop.f32.mrb[6].mxu1 }
 0x16e   :  { %v861_v9 = vpop.f32.mrb[7].mxu1 }
 0x19e   :  { %v815_v19 = vpop.f32.mrb[0].mxu0 }
 0x19f   :  { %v1379_v20 = vadd.f32 %v815_v19, %v734_v17  ;;  %v817_v21 = vpop.f32.mrb[1].mxu0 }
 0x1a0   :  { %v1382_v22 = vadd.f32 %v817_v21, %v736_v18  ;;  %v819_v23 = vpop.f32.mrb[2].mxu0 }
 0x1a1   :  { %v1380_v24 = vadd.f32 %v1379_v20, %v856_v6  ;;  %v820_v25 = vpop.f32.mrb[3].mxu0 }
 0x1a2   :  { %v1383_v26 = vadd.f32 %v1382_v22, %v858_v7 }
 0x1a3   :  { %vm863_vm1 = vcmp.ge.f32.partialorder %v1380_v24, 0.0  ;;  %v865_v27 = vmul.f32 0.01, %v1380_v24 }
 0x1a4   :  { %v866_v28 = vmul.f32 0.01, %v1383_v26  ;;  %vm864_vm2 = vcmp.ge.f32.partialorder %v1383_v26, 0.0 }
 0x1a5   :  { %v867_v31 = vsel %vm863_vm1, %v1380_v24, %v865_v27 }
 0x1a6   :  { %v868_v32 = vsel %vm864_vm2, %v1383_v26, %v866_v28  ;;  %v869_v35 = vpack.c.bf16 %v867_v31, %v867_v31 }
 0x1a7   :  { %v870_v33 = vpack.c.bf16 %v868_v32, %v868_v32 }
 0x1a9   :  { %1038 = vmatprep.mubr.bf16.mxu1 %v870_v33 }
 0x1aa   :  { %1039 = vmatmul.mubr.bf16.vlgmr.msra.gmra.mrb[8].mxu1 %v869_v35 }
 0x1ab   :  { %1356 = vmatpush3.bf16.msra.mxu1 %v1355_v34  ;;  %1351 = vmatprep.mubr.msk.f32.mxu1 %vm1692_vm3, %v1693_v57 }
 0x1ac   :  { %1357 = vmatprep.subr.bf16.mxu1 %v1691_v1 }
 0x1af   :  { %1359 = vmatpush3.bf16.msra.mxu1 %v1358_v38 }
 0x1b0   :  { %1360 = vmatprep.subr.bf16.mxu1 %v1691_v1 }
 0x1b3   :  { %1362 = vmatpush3.bf16.msra.mxu1 %v1361_v41 }
 0x1b4   :  { %1363 = vmatprep.subr.bf16.mxu1 %v1691_v1 }
 0x1b7   :  { %1365 = vmatpush3.bf16.msra.mxu1 %v1364_v44 }
 0x1b8   :  { %1366 = vmatprep.subr.bf16.mxu1 %v1691_v1 }
 0x1bb   :  { %1368 = vmatpush3.bf16.msra.mxu1 %v1367_v47 }
 0x1bc   :  { %1369 = vmatprep.subr.bf16.mxu1 %v1691_v1 }
 0x1bf   :  { %1371 = vmatpush3.bf16.msra.mxu1 %v1370_v50 }
 0x1c0   :  { %1372 = vmatprep.subr.bf16.mxu1 %v1691_v1 }
 0x1c3   :  { %1374 = vmatpush3.bf16.msra.mxu1 %v1373_v53 }
 0x1c4   :  { %1375 = vmatprep.subr.bf16.mxu1 %v1691_v1 }
 0x1c7   :  { %1377 = vmatpush3.bf16.msra.mxu1 %v1376_v56 }
 0x27d   :  { %v1296_v58 = vpop.f32.mrb[8].mxu1 }
 0x27e   :  { %v1297_v60 = vpop.f32.mrb[9].mxu1 }
 0x27f   :  { %v1298_v61 = vadd.f32 %v1297_v60, %v1296_v58  ;;  %v1299_v62 = vpop.f32.mrb[10].mxu1 }
 0x280   :  { %v1300_v63 = vpop.f32.mrb[11].mxu1 }
 0x281   :  { %v1041_v0 = vadd.f32 %v1298_v61, %v1262_v59 }
 0x283   :  { %v1047_v2 = vmul.f32 0.01, %v1041_v0  ;;  %vm1046_vm4 = vcmp.ge.f32.partialorder %v1041_v0, 0.0 }
 0x285   :  { %v1048_v1 = vsel %vm1046_vm4, %v1041_v0, %v1047_v2 }
 0x286   :  { %1352 = vmatmul.mubr.f32.vlgmr.msra.gmra.mrb[12].mxu1 %v1048_v1 }
 0x359   :  { %v1138_v4 = vpop.f32.mrb[12].mxu1 }
 0x35a   :  { %v1139_v5 = vadd.f32 %v1279_v3, %v1138_v4  ;;  %v1353_v6 = vpop.f32.mrb[13].mxu1 }
 0x35c   :  { %v1143_v7 = vmul.f32 0.01, %v1139_v5  ;;  %vm1142_vm5 = vcmp.ge.f32.partialorder %v1139_v5, 0.0 }
 0x35e   :  { %v1144_v8 = vsel %vm1142_vm5, %v1139_v5, %v1143_v7 }
 0x35f   :  { %1145 = vst [vmem:[#allocation10] sm:$0xff] %v1144_v8 }
 0x360   :  { %1663 = shalt.err (!%p1660_p8)
}
 0x361   :  { %s1664_s6 = scalar_lea.hbm %s1825_s7, 128 }
 0x362   :  { %p1665_p9 = scmp.ne.s32.totalorder %s1825_s7, %s1664_s6  ;;  %p1668_p10 = scmp.lt.u32.totalorder %s1664_s6, %s1825_s7 }
 0x364   :  { %p1670_p11 = pnand %p1668_p10, %p1665_p9 }
 0x366   :  { %1673 = shalt.err (!%p1670_p11)
}
 0x367   :  { %1155 = dma.vmem_to_hbm [thread:$0]  %s1153_s8, 128, %s1825_s7, [#allocation4]  }
 0x368   :  { %1680 = dma.done.wait [#allocation4], 128  }
 0x369   :  { %1681 = vsyncadd [#allocation4], 4294967168 }
 0x36a   :  { %1159 = vsyncpa [#allocation3], 1 }
 0x36b   :  { %1160 = vsyncpa [#allocation6], 1 }
 0x36c   :  { %1161 = vsyncpa [#allocation9], 1 }
 0x36d   :  { %1162 = vsyncpa [#allocation4], 1 }

</bundles_post_ra>
